<compile_context>
chip_gen: v5e
topology: v5e:2x2
jax: 0.10.0
libtpu: 0.0.40
codegen_flags: <defaults>
</compile_context>

<pallas_src>
import math

import jax
import jax.numpy as jnp
from jax.experimental import pallas as pl
from jax.experimental.pallas import tpu as pltpu


def _act(x, activation):
    if activation == "relu":
        return jnp.maximum(x, 0.0)
    if activation == "gelu":
        # TODO(synk): PyTorch nn.GELU uses the exact erf form; tanh approximation used here.
        return jax.nn.gelu(x, approximate=True)
    raise NotImplementedError(f"activation {activation} is not implemented")


def _pick_batch_tile(batch, max_bt=8):
    """Largest divisor of `batch` <= max_bt that still leaves >= 2 grid steps (v7x has 2 TCs)."""
    best = 1
    for d in range(1, min(batch, max_bt) + 1):
        if batch % d == 0 and (batch // d >= 2 or batch == 1):
            best = d
    return best


def _time_pool(sc, t_len, f_out):
    """Sum a (1, t_len*f_out) time-major row over time -> (1, f_out), O(log T) lane-slice adds."""
    pooled = sc
    rows = t_len
    p2 = 1
    while p2 * 2 <= rows:
        p2 *= 2
    if p2 < rows:                          # fold the non-power-of-two excess onto the front
        extra = rows - p2
        head = pooled[:, :extra * f_out] + pooled[:, p2 * f_out:rows * f_out]
        pooled = jnp.concatenate([head, pooled[:, extra * f_out:p2 * f_out]], axis=1)
        rows = p2
    while rows > 1:                        # binary fold
        half = rows // 2
        pooled = pooled[:, :half * f_out] + pooled[:, half * f_out:rows * f_out]
        rows = half
    return pooled


def _time_tile(g, t_len):
    """Replicate a (1, f_out) gate to (1, t_len*f_out) (time-major) with O(log T) lane concats."""
    f_out = g.shape[1]
    gate = g
    cur = 1
    while cur * 2 <= t_len:
        gate = jnp.concatenate([gate, gate], axis=1)
        cur *= 2
    if cur < t_len:
        gate = jnp.concatenate([gate, gate[:, :(t_len - cur) * f_out]], axis=1)
    return gate


def _make_block_kernel(*, bt, n_rows, c_in, c_out, f_in, f_out, t_len, hidden,
                       strided, has_enc, activation, ln_eps):
    """Fused kernel for one LocalFeatureExtracterBlock (bt batch elements per grid step)."""
    d0 = f_in + 1                        # data offset inside the padded flat scratch (non-strided)
    lpad = (t_len + 2) * f_in + 2        # padded flat scratch length (non-strided)
    n_act = 2 if strided else 1
    n_w = 5 + (1 if strided else 0) + (1 if (has_enc and not strided) else 0)

    def kernel(*refs):
        act_refs = refs[:n_act]
        w_refs = refs[n_act:n_act + n_w]
        out_ref = refs[n_act + n_w]
        wpad_ref = refs[n_act + n_w + 1] if not strided else None

        dwp_ref, wp2_ref, wp3_ref, fw1p_ref, fw2p_ref = w_refs[:5]
        wi = 5
        if strided:
            dsp_ref = w_refs[wi]
            wi += 1
        if has_enc and not strided:
            enc_ref = w_refs[wi]
            wi += 1

        # --- unpack the packed weight operands (static slices of tiny refs) ---
        dw = dwp_ref[:, 0:9]                 # (c_in, 9) depthwise 3x3 taps, k = kh*3 + kw
        dwb = dwp_ref[:, 9:10]               # depthwise bias
        lng = dwp_ref[:, 10:11]              # LayerNorm gamma
        lnb = dwp_ref[:, 11:12]              # LayerNorm beta
        w2 = wp2_ref[:, 0:c_in]
        b2 = wp2_ref[:, c_in:c_in + 1]
        w3 = wp3_ref[:, 0:c_out]
        b3 = wp3_ref[:, c_out:c_out + 1]
        fw1 = fw1p_ref[0:f_out, :]           # (f_out, hidden)
        fb1 = fw1p_ref[f_out:f_out + 1, :]
        fw2 = fw2p_ref[0:hidden, :]          # (hidden, f_out)
        fb2 = fw2p_ref[hidden:hidden + 1, :]
        if strided:
            dsw = dsp_ref[:, 0:c_in]
            dssh = dsp_ref[:, c_in:c_in + 1]

        if not strided:
            # frequency index of every flattened output row (r = t*F + f -> f = r % F); hoisted.
            f_idx = jax.lax.broadcasted_iota(jnp.int32, (1, n_rows), 1) % f_out
            zero_guard = jnp.zeros((c_in, d0), jnp.float32)

        for b in range(bt):
            # --- depthwise 3x3 conv (stride (s,1)): 9 taps = static lane-offset ref slices ---
            if strided:
                taps_ref, xres_ref = act_refs
                acc = jnp.zeros((c_in, n_rows), jnp.float32)
                for di in range(3):                       # frequency tap (pre-strided row sets)
                    for dj in range(3):                   # time tap
                        tap = taps_ref[b, di, :, dj * f_out:dj * f_out + n_rows]
                        acc = acc + tap * dw[:, di * 3 + dj:di * 3 + dj + 1]
            else:
                x_ref, = act_refs
                xw = x_ref[b]                             # (c_in, n_rows) unpadded input
                if has_enc:
                    xw = xw + enc_ref[...]                # per-frequency encoding (in-kernel)
                # Build the time-padded flat copy in VMEM (guard zeros + data region).
                wpad_ref[b, :, 0:d0] = zero_guard
                wpad_ref[b, :, d0 + n_rows:lpad] = zero_guard
                wpad_ref[b, :, d0:d0 + n_rows] = xw
                acc = jnp.zeros((c_in, n_rows), jnp.float32)
                for di in range(3):                       # frequency tap offset (df = di - 1)
                    part = jnp.zeros((c_in, n_rows), jnp.float32)
                    for dj in range(3):                   # time tap offset (dt = dj - 1)
                        start = dj * f_in + di
                        tap = wpad_ref[b, :, start:start + n_rows]
                        part = part + tap * dw[:, di * 3 + dj:di * 3 + dj + 1]
                    if di == 0:                           # zero where f-1 wraps out of range
                        part = jnp.where(f_idx == 0, 0.0, part)
                    elif di == 2:                         # zero where f+1 wraps out of range
                        part = jnp.where(f_idx == f_out - 1, 0.0, part)
                    acc = acc + part
            acc = acc + dwb

            # --- LayerNorm over the channel (sublane) axis, eps=1e-4 (matches PyTorch block).
            #     For c_in == 1 this reduces to beta everywhere, exactly like LayerNorm(1). ---
            mu = jnp.mean(acc, axis=0, keepdims=True)
            var = jnp.mean((acc - mu) ** 2, axis=0, keepdims=True)
            h = (acc - mu) * jax.lax.rsqrt(var + ln_eps)
            h = h * lng + lnb

            # --- two 1x1 convs (channel matmuls, f32) ---
            if c_in == 1:
                h2 = w2 * h + b2                          # rank-1 outer product (VPU)
            else:
                h2 = jnp.dot(w2, h, preferred_element_type=jnp.float32) + b2
            h2 = _act(h2, activation)
            h3 = jnp.dot(w3, h2, preferred_element_type=jnp.float32) + b3
            h3 = _act(h3, activation)                     # (c_out, n_rows)

            # --- frequency-wise squeeze-excitation: mean over (channels, time) per freq bin ---
            sc = jnp.sum(h3, axis=0, keepdims=True)       # (1, n_rows) channel sum
            pooled = _time_pool(sc, t_len, f_out) * (1.0 / (c_out * t_len))   # (1, f_out)
            z = _act(jnp.dot(pooled, fw1, preferred_element_type=jnp.float32) + fb1, activation)
            g = jax.nn.sigmoid(jnp.dot(z, fw2, preferred_element_type=jnp.float32) + fb2)
            gate = _time_tile(g, t_len)                   # (1, n_rows)
            w_out = h3 * gate

            # --- residual path (optional strided 1x1 conv, BatchNorm folded into the weight) ---
            if strided:
                res = jnp.dot(dsw, xres_ref[b], preferred_element_type=jnp.float32) + dssh
            else:
                res = x_ref[b]                            # broadcasts over channels if c_in == 1
            out_ref[b] = (res + w_out).astype(out_ref.dtype)

    return kernel


def _block_forward(x, params, *, stride, activation):
    """x: (B, C_in, T, F) float32 -> (B, C_out, T, F_out)   (time-major / frequency-minor)."""
    B, c_in, T, F = x.shape
    s = stride[0]
    assert stride[1] == 1, "time stride != 1 not supported"
    assert F % s == 0, "frequency bins must be divisible by the stride"
    f_out = F // s
    n_rows = T * f_out
    c_out = params["wp2"].shape[0]
    hidden = params["fw1p"].shape[1]
    strided = s > 1
    enc = params.get("freq_enc")
    has_enc = enc is not None
    bt = _pick_batch_tile(B)
    grid = (B // bt,)

    # TODO(synk): the masked (m is not None) path of the PyTorch module is not implemented.
    if strided:
        # Wrapper-side gather of the 3 frequency-strided row sets only (time taps stay in-kernel).
        w = x + enc if has_enc else x
        wp = jnp.pad(w, ((0, 0), (0, 0), (1, 1), (1, 1)))            # pad T and F by 1
        rows = [wp[:, :, :, di: di + s * (f_out - 1) + 1: s] for di in range(3)]
        taps = jnp.stack(rows, axis=1).reshape(B, 3, c_in, (T + 2) * f_out)
        xres = x[:, :, :, ::s].reshape(B, c_in, n_rows)              # residual uses un-encoded x
        act_in = [taps, xres]
        act_specs = [
            pl.BlockSpec((bt, 3, c_in, (T + 2) * f_out), lambda i: (i, 0, 0, 0)),
            pl.BlockSpec((bt, c_in, n_rows), lambda i: (i, 0, 0)),
        ]
        scratch_shapes = []
        scratch_bytes = 0
    else:
        # Unpadded flat activation; padding + frequency encoding happen inside the kernel.
        act_in = [x.reshape(B, c_in, n_rows)]
        act_specs = [pl.BlockSpec((bt, c_in, n_rows), lambda i: (i, 0, 0))]
        lpad = (T + 2) * F + 2
        scratch_shapes = [pltpu.VMEM((bt, c_in, lpad), jnp.float32)]
        scratch_bytes = bt * c_in * lpad * 4

    weights = [params["dwp"], params["wp2"], params["wp3"], params["fw1p"], params["fw2p"]]
    if strided:
        weights.append(params["dsp"])
    if has_enc and not strided:
        weights.append(jnp.tile(enc.reshape(1, F), (1, T)))          # (1, n_rows) per-row encoding

    def _wspec(arr):
        nd = arr.ndim
        return pl.BlockSpec(arr.shape, lambda i, _nd=nd: (0,) * _nd)

    in_specs = act_specs + [_wspec(a) for a in weights]

    kernel = _make_block_kernel(bt=bt, n_rows=n_rows, c_in=c_in, c_out=c_out, f_in=F,
                                f_out=f_out, t_len=T, hidden=hidden, strided=strided,
                                has_enc=has_enc, activation=activation, ln_eps=1e-4)

    # vmem_limit from the actual block / scratch sizes (cap for v7x's 64 MiB VMEM per TC).
    blk_in_bytes = sum((a.size // B) * bt * a.dtype.itemsize for a in act_in)
    w_bytes = sum(int(wt.size) * wt.dtype.itemsize for wt in weights)
    out_bytes = bt * c_out * n_rows * 4
    interm_bytes = bt * c_out * n_rows * 4
    est = 2 * (blk_in_bytes + w_bytes + out_bytes) + scratch_bytes + 8 * interm_bytes + (1 << 20)
    vmem_limit = int(max(16 << 20, min(40 << 20, est)))

    out = pl.pallas_call(
        kernel,
        out_shape=jax.ShapeDtypeStruct((B, c_out, n_rows), jnp.float32),
        grid=grid,
        in_specs=in_specs,
        out_specs=pl.BlockSpec((bt, c_out, n_rows), lambda i: (i, 0, 0)),
        scratch_shapes=scratch_shapes,
        compiler_params=pltpu.CompilerParams(
            dimension_semantics=("parallel",),
            vmem_limit_bytes=vmem_limit),
    )(*act_in, *weights)
    return out.reshape(B, c_out, T, f_out)


def _init_block_params(key, *, c_in, c_out, f_in, f_out, hidden, stride,
                       use_frequency_encoding):
    ks = jax.random.split(key, 12)

    def rnd(k, shape, scale):
        return jax.random.normal(k, shape, jnp.float32) * scale

    dww = rnd(ks[0], (c_in, 9), 1.0 / 3.0)                  # depthwise 3x3, k = kh*3 + kw
    dwb = rnd(ks[1], (c_in, 1), 0.1)
    lng = jnp.ones((c_in, 1), jnp.float32)
    lnb = jnp.zeros((c_in, 1), jnp.float32)
    w2 = rnd(ks[2], (c_out, c_in), 1.0 / math.sqrt(max(c_in, 1)))
    b2 = rnd(ks[3], (c_out, 1), 0.1)
    w3 = rnd(ks[4], (c_out, c_out), 1.0 / math.sqrt(c_out))
    b3 = rnd(ks[5], (c_out, 1), 0.1)
    fw1T = rnd(ks[6], (f_out, hidden), 1.0 / math.sqrt(f_out))
    fb1 = rnd(ks[7], (1, hidden), 0.1)
    fw2T = rnd(ks[8], (hidden, f_out), 1.0 / math.sqrt(hidden))
    fb2 = rnd(ks[9], (1, f_out), 0.1)

    p = {
        # packed operands -> fewer DMA descriptors / VMEM buffers per kernel call
        "dwp": jnp.concatenate([dww, dwb, lng, lnb], axis=1),     # (c_in, 12)
        "wp2": jnp.concatenate([w2, b2], axis=1),                 # (c_out, c_in+1)
        "wp3": jnp.concatenate([w3, b3], axis=1),                 # (c_out, c_out+1)
        "fw1p": jnp.concatenate([fw1T, fb1], axis=0),             # (f_out+1, hidden)
        "fw2p": jnp.concatenate([fw2T, fb2], axis=0),             # (hidden+1, f_out)
        "freq_enc": None,
    }
    if use_frequency_encoding:
        p["freq_enc"] = rnd(ks[10], (1, 1, 1, f_in), f_in ** -0.5)
    if stride[0] > 1:
        # TODO(synk): nn.BatchNorm2d folded in inference mode (running stats), not batch stats.
        dsw = rnd(ks[11], (c_out, c_in), 1.0 / math.sqrt(c_in))
        bn_gamma = jnp.ones((c_out, 1), jnp.float32)
        bn_beta = jnp.zeros((c_out, 1), jnp.float32)
        bn_mean = jnp.zeros((c_out, 1), jnp.float32)
        bn_var = jnp.ones((c_out, 1), jnp.float32)
        scale = bn_gamma / jnp.sqrt(bn_var + 1e-5)
        p["dsp"] = jnp.concatenate([dsw * scale, bn_beta - bn_mean * scale], axis=1)
    return p


def init_module_params(key, *, frequency_bins_num, out_channels_list, stride_list,
                       repeat_num_list, fwse_hidden_dim, use_frequency_encoding):
    """Mirrors LocalFeatureExtractorModule.__init__ / make_blocks."""
    blocks = []
    in_channels = 1
    f = frequency_bins_num
    for out_channels, stride, repeat_num in zip(out_channels_list, stride_list, repeat_num_list):
        first_stride = stride
        for _ in range(repeat_num):
            key, sub = jax.random.split(key)
            f_out = f // first_stride[0]
            blocks.append(dict(
                params=_init_block_params(sub, c_in=in_channels, c_out=out_channels,
                                          f_in=f, f_out=f_out, hidden=fwse_hidden_dim,
                                          stride=first_stride,
                                          use_frequency_encoding=use_frequency_encoding),
                stride=first_stride))
            first_stride = (1, 1)
            in_channels = out_channels
            f = f_out
    return blocks


def local_feature_extractor_forward(x_nchw, blocks, *, activation="relu"):
    """x_nchw: (B, 1, F, T) -> (B, C_last, F_last, T), matching the PyTorch module."""
    x = jnp.transpose(x_nchw, (0, 1, 3, 2)).astype(jnp.float32)    # -> (B, C, T, F)
    for blk in blocks:
        x = _block_forward(x, blk["params"], stride=blk["stride"], activation=activation)
    return jnp.transpose(x, (0, 1, 3, 2))                          # back to NCHW (B, C, F, T)


if __name__ == "__main__":
    key = jax.random.PRNGKey(0)
    frequency_bins_num = 16
    cfg = dict(frequency_bins_num=frequency_bins_num,
               out_channels_list=[8, 16],
               stride_list=[(1, 1), (2, 1)],
               repeat_num_list=[2, 2],
               fwse_hidden_dim=8,
               use_frequency_encoding=False)
    pkey, xkey = jax.random.split(key)
    blocks = init_module_params(pkey, **cfg)

    B, T = 2, 16
    x = jax.random.normal(xkey, (B, 1, frequency_bins_num, T), jnp.float32)  # NCHW input

    y = local_feature_extractor_forward(x, blocks, activation="relu")
    y = jax.block_until_ready(y)

    assert y.shape == (B, 16, frequency_bins_num // 2, T), y.shape
    assert bool(jnp.all(jnp.isfinite(y)))
    print("KERNEL_OK")
</pallas_src>

<mosaic_0001>
module attributes {stable_mosaic.version = 11 : i64} {
  func.func @kernel(%arg0: i32, %arg1: memref<1x1x256xf32, #tpu.memory_space<vmem>>, %arg2: memref<1x12xf32, #tpu.memory_space<vmem>>, %arg3: memref<8x2xf32, #tpu.memory_space<vmem>>, %arg4: memref<8x9xf32, #tpu.memory_space<vmem>>, %arg5: memref<17x8xf32, #tpu.memory_space<vmem>>, %arg6: memref<9x16xf32, #tpu.memory_space<vmem>>, %arg7: memref<1x8x256xf32, #tpu.memory_space<vmem>>, %arg8: memref<1x1x290xf32, #tpu.memory_space<vmem>>) attributes {dimension_semantics = [#tpu.dimension_semantics<parallel>], iteration_bounds = array<i64: 2>, scalar_prefetch = 0 : i64, scratch_operands = 1 : i64, tpu.core_type = #tpu.core_type<tc>, window_params = [{transform_indices = @transform_0, window_bounds = array<i64: 1, 1, 256>}, {pipeline_mode = #tpu.pipeline_mode<synchronous>, transform_indices = @transform_1, window_bounds = array<i64: 1, 12>}, {pipeline_mode = #tpu.pipeline_mode<synchronous>, transform_indices = @transform_2, window_bounds = array<i64: 8, 2>}, {pipeline_mode = #tpu.pipeline_mode<synchronous>, transform_indices = @transform_3, window_bounds = array<i64: 8, 9>}, {pipeline_mode = #tpu.pipeline_mode<synchronous>, transform_indices = @transform_4, window_bounds = array<i64: 17, 8>}, {pipeline_mode = #tpu.pipeline_mode<synchronous>, transform_indices = @transform_5, window_bounds = array<i64: 9, 16>}, {transform_indices = @transform_6, window_bounds = array<i64: 1, 8, 256>}]} {
    %c0 = arith.constant 0 : index
    %c0_0 = arith.constant 0 : index
    %0 = vector.load %arg2[%c0, %c0_0] : memref<1x12xf32, #tpu.memory_space<vmem>>, vector<1x9xf32>
    %c0_1 = arith.constant 0 : index
    %c9 = arith.constant 9 : index
    %1 = vector.load %arg2[%c0_1, %c9] : memref<1x12xf32, #tpu.memory_space<vmem>>, vector<1x1xf32>
    %c0_2 = arith.constant 0 : index
    %c10 = arith.constant 10 : index
    %2 = vector.load %arg2[%c0_2, %c10] : memref<1x12xf32, #tpu.memory_space<vmem>>, vector<1x1xf32>
    %c0_3 = arith.constant 0 : index
    %c11 = arith.constant 11 : index
    %3 = vector.load %arg2[%c0_3, %c11] : memref<1x12xf32, #tpu.memory_space<vmem>>, vector<1x1xf32>
    %c0_4 = arith.constant 0 : index
    %c0_5 = arith.constant 0 : index
    %4 = vector.load %arg3[%c0_4, %c0_5] : memref<8x2xf32, #tpu.memory_space<vmem>>, vector<8x1xf32>
    %c0_6 = arith.constant 0 : index
    %c1 = arith.constant 1 : index
    %5 = vector.load %arg3[%c0_6, %c1] : memref<8x2xf32, #tpu.memory_space<vmem>>, vector<8x1xf32>
    %c0_7 = arith.constant 0 : index
    %c0_8 = arith.constant 0 : index
    %6 = vector.load %arg4[%c0_7, %c0_8] : memref<8x9xf32, #tpu.memory_space<vmem>>, vector<8x8xf32>
    %c0_9 = arith.constant 0 : index
    %c8 = arith.constant 8 : index
    %7 = vector.load %arg4[%c0_9, %c8] : memref<8x9xf32, #tpu.memory_space<vmem>>, vector<8x1xf32>
    %c0_10 = arith.constant 0 : index
    %c0_11 = arith.constant 0 : index
    %8 = vector.load %arg5[%c0_10, %c0_11] : memref<17x8xf32, #tpu.memory_space<vmem>>, vector<16x8xf32>
    %c16 = arith.constant 16 : index
    %c0_12 = arith.constant 0 : index
    %9 = vector.load %arg5[%c16, %c0_12] : memref<17x8xf32, #tpu.memory_space<vmem>>, vector<1x8xf32>
    %c0_13 = arith.constant 0 : index
    %c0_14 = arith.constant 0 : index
    %10 = vector.load %arg6[%c0_13, %c0_14] : memref<9x16xf32, #tpu.memory_space<vmem>>, vector<8x16xf32>
    %c8_15 = arith.constant 8 : index
    %c0_16 = arith.constant 0 : index
    %11 = vector.load %arg6[%c8_15, %c0_16] : memref<9x16xf32, #tpu.memory_space<vmem>>, vector<1x16xf32>
    %12 = tpu.iota {dimensions = array<i32: 1>} : vector<1x256xi32>
    %c16_i32 = arith.constant 16 : i32
    %c0_i32 = arith.constant 0 : i32
    %13 = arith.cmpi eq, %c16_i32, %c0_i32 : i32
    %c1_i32 = arith.constant 1 : i32
    %14 = arith.select %13, %c1_i32, %c16_i32 : i32
    %15 = vector.broadcast %14 : i32 to vector<1x256xi32>
    %16 = arith.remsi %12, %15 : vector<1x256xi32>
    %c0_i32_17 = arith.constant 0 : i32
    %17 = vector.broadcast %c0_i32_17 : i32 to vector<1x256xi32>
    %18 = arith.cmpi ne, %16, %17 : vector<1x256xi32>
    %c0_i32_18 = arith.constant 0 : i32
    %19 = vector.broadcast %c0_i32_18 : i32 to vector<1x256xi32>
    %20 = arith.cmpi slt, %16, %19 : vector<1x256xi32>
    %c0_i32_19 = arith.constant 0 : i32
    %21 = arith.cmpi slt, %14, %c0_i32_19 : i32
    %22 = vector.broadcast %21 : i1 to vector<1x256xi1>
    %23 = vector.broadcast %22 : vector<1x256xi1> to vector<1x256xi1>
    %24 = arith.xori %20, %23 : vector<1x256xi1>
    %25 = arith.andi %24, %18 : vector<1x256xi1>
    %26 = vector.broadcast %14 : i32 to vector<1x256xi32>
    %27 = arith.addi %16, %26 : vector<1x256xi32>
    %28 = arith.select %25, %27, %16 : vector<1x256xi1>, vector<1x256xi32>
    %cst = arith.constant 0.000000e+00 : f32
    %29 = vector.broadcast %cst : f32 to vector<1x17xf32>
    %c0_20 = arith.constant 0 : index
    %c0_21 = arith.constant 0 : index
    %c0_22 = arith.constant 0 : index
    %30 = vector.load %arg1[%c0_20, %c0_21, %c0_22] : memref<1x1x256xf32, #tpu.memory_space<vmem>>, vector<1x1x256xf32>
    %31 = vector.shape_cast %30 : vector<1x1x256xf32> to vector<1x256xf32>
    %c0_23 = arith.constant 0 : index
    %c0_24 = arith.constant 0 : index
    %c0_25 = arith.constant 0 : index
    %32 = vector.load %arg8[%c0_23, %c0_24, %c0_25] : memref<1x1x290xf32, #tpu.memory_space<vmem>>, vector<1x1x17xf32>
    %33 = vector.shape_cast %32 : vector<1x1x17xf32> to vector<1x17xf32>
    %34 = vector.shape_cast %29 : vector<1x17xf32> to vector<1x1x17xf32>
    tpu.vector_store %arg8[%c0_23, %c0_24, %c0_25], %34 {strides = array<i32>} : memref<1x1x290xf32, #tpu.memory_space<vmem>>, vector<1x1x17xf32>,
    %c0_26 = arith.constant 0 : index
    %c0_27 = arith.constant 0 : index
    %c273 = arith.constant 273 : index
    %35 = vector.load %arg8[%c0_26, %c0_27, %c273] : memref<1x1x290xf32, #tpu.memory_space<vmem>>, vector<1x1x17xf32>
    %36 = vector.shape_cast %35 : vector<1x1x17xf32> to vector<1x17xf32>
    %37 = vector.shape_cast %29 : vector<1x17xf32> to vector<1x1x17xf32>
    tpu.vector_store %arg8[%c0_26, %c0_27, %c273], %37 {strides = array<i32>} : memref<1x1x290xf32, #tpu.memory_space<vmem>>, vector<1x1x17xf32>,
    %c0_28 = arith.constant 0 : index
    %c0_29 = arith.constant 0 : index
    %c17 = arith.constant 17 : index
    %38 = vector.load %arg8[%c0_28, %c0_29, %c17] : memref<1x1x290xf32, #tpu.memory_space<vmem>>, vector<1x1x256xf32>
    %39 = vector.shape_cast %38 : vector<1x1x256xf32> to vector<1x256xf32>
    %40 = vector.shape_cast %31 : vector<1x256xf32> to vector<1x1x256xf32>
    tpu.vector_store %arg8[%c0_28, %c0_29, %c17], %40 {strides = array<i32>} : memref<1x1x290xf32, #tpu.memory_space<vmem>>, vector<1x1x256xf32>,
    %cst_30 = arith.constant 0.000000e+00 : f32
    %41 = vector.broadcast %cst_30 : f32 to vector<1x256xf32>
    %cst_31 = arith.constant 0.000000e+00 : f32
    %42 = vector.broadcast %cst_31 : f32 to vector<1x256xf32>
    %c0_32 = arith.constant 0 : index
    %c0_33 = arith.constant 0 : index
    %c0_34 = arith.constant 0 : index
    %43 = vector.load %arg8[%c0_32, %c0_33, %c0_34] : memref<1x1x290xf32, #tpu.memory_space<vmem>>, vector<1x1x256xf32>
    %44 = vector.shape_cast %43 : vector<1x1x256xf32> to vector<1x256xf32>
    %45 = vector.extract_strided_slice %0 {offsets = [0, 0], sizes = [1, 1], strides = [1, 1]} : vector<1x9xf32> to vector<1x1xf32>
    %46 = vector.broadcast %45 : vector<1x1xf32> to vector<1x256xf32>
    %47 = arith.mulf %44, %46 : vector<1x256xf32>
    %48 = arith.addf %42, %47 : vector<1x256xf32>
    %c0_35 = arith.constant 0 : index
    %c0_36 = arith.constant 0 : index
    %c16_37 = arith.constant 16 : index
    %49 = vector.load %arg8[%c0_35, %c0_36, %c16_37] : memref<1x1x290xf32, #tpu.memory_space<vmem>>, vector<1x1x256xf32>
    %50 = vector.shape_cast %49 : vector<1x1x256xf32> to vector<1x256xf32>
    %51 = vector.extract_strided_slice %0 {offsets = [0, 1], sizes = [1, 1], strides = [1, 1]} : vector<1x9xf32> to vector<1x1xf32>
    %52 = vector.broadcast %51 : vector<1x1xf32> to vector<1x256xf32>
    %53 = arith.mulf %50, %52 : vector<1x256xf32>
    %54 = arith.addf %48, %53 : vector<1x256xf32>
    %c0_38 = arith.constant 0 : index
    %c0_39 = arith.constant 0 : index
    %c32 = arith.constant 32 : index
    %55 = vector.load %arg8[%c0_38, %c0_39, %c32] : memref<1x1x290xf32, #tpu.memory_space<vmem>>, vector<1x1x256xf32>
    %56 = vector.shape_cast %55 : vector<1x1x256xf32> to vector<1x256xf32>
    %57 = vector.extract_strided_slice %0 {offsets = [0, 2], sizes = [1, 1], strides = [1, 1]} : vector<1x9xf32> to vector<1x1xf32>
    %58 = vector.broadcast %57 : vector<1x1xf32> to vector<1x256xf32>
    %59 = arith.mulf %56, %58 : vector<1x256xf32>
    %60 = arith.addf %54, %59 : vector<1x256xf32>
    %c0_i32_40 = arith.constant 0 : i32
    %61 = vector.broadcast %c0_i32_40 : i32 to vector<1x256xi32>
    %62 = arith.cmpi eq, %28, %61 : vector<1x256xi32>
    %cst_41 = arith.constant 0.000000e+00 : f32
    %63 = vector.broadcast %cst_41 : f32 to vector<1x256xf32>
    %64 = arith.select %62, %63, %60 : vector<1x256xi1>, vector<1x256xf32>
    %65 = arith.addf %41, %64 : vector<1x256xf32>
    %cst_42 = arith.constant 0.000000e+00 : f32
    %66 = vector.broadcast %cst_42 : f32 to vector<1x256xf32>
    %c0_43 = arith.constant 0 : index
    %c0_44 = arith.constant 0 : index
    %c1_45 = arith.constant 1 : index
    %67 = vector.load %arg8[%c0_43, %c0_44, %c1_45] : memref<1x1x290xf32, #tpu.memory_space<vmem>>, vector<1x1x256xf32>
    %68 = vector.shape_cast %67 : vector<1x1x256xf32> to vector<1x256xf32>
    %69 = vector.extract_strided_slice %0 {offsets = [0, 3], sizes = [1, 1], strides = [1, 1]} : vector<1x9xf32> to vector<1x1xf32>
    %70 = vector.broadcast %69 : vector<1x1xf32> to vector<1x256xf32>
    %71 = arith.mulf %68, %70 : vector<1x256xf32>
    %72 = arith.addf %66, %71 : vector<1x256xf32>
    %c0_46 = arith.constant 0 : index
    %c0_47 = arith.constant 0 : index
    %c17_48 = arith.constant 17 : index
    %73 = vector.load %arg8[%c0_46, %c0_47, %c17_48] : memref<1x1x290xf32, #tpu.memory_space<vmem>>, vector<1x1x256xf32>
    %74 = vector.shape_cast %73 : vector<1x1x256xf32> to vector<1x256xf32>
    %75 = vector.extract_strided_slice %0 {offsets = [0, 4], sizes = [1, 1], strides = [1, 1]} : vector<1x9xf32> to vector<1x1xf32>
    %76 = vector.broadcast %75 : vector<1x1xf32> to vector<1x256xf32>
    %77 = arith.mulf %74, %76 : vector<1x256xf32>
    %78 = arith.addf %72, %77 : vector<1x256xf32>
    %c0_49 = arith.constant 0 : index
    %c0_50 = arith.constant 0 : index
    %c33 = arith.constant 33 : index
    %79 = vector.load %arg8[%c0_49, %c0_50, %c33] : memref<1x1x290xf32, #tpu.memory_space<vmem>>, vector<1x1x256xf32>
    %80 = vector.shape_cast %79 : vector<1x1x256xf32> to vector<1x256xf32>
    %81 = vector.extract_strided_slice %0 {offsets = [0, 5], sizes = [1, 1], strides = [1, 1]} : vector<1x9xf32> to vector<1x1xf32>
    %82 = vector.broadcast %81 : vector<1x1xf32> to vector<1x256xf32>
    %83 = arith.mulf %80, %82 : vector<1x256xf32>
    %84 = arith.addf %78, %83 : vector<1x256xf32>
    %85 = arith.addf %65, %84 : vector<1x256xf32>
    %cst_51 = arith.constant 0.000000e+00 : f32
    %86 = vector.broadcast %cst_51 : f32 to vector<1x256xf32>
    %c0_52 = arith.constant 0 : index
    %c0_53 = arith.constant 0 : index
    %c2 = arith.constant 2 : index
    %87 = vector.load %arg8[%c0_52, %c0_53, %c2] : memref<1x1x290xf32, #tpu.memory_space<vmem>>, vector<1x1x256xf32>
    %88 = vector.shape_cast %87 : vector<1x1x256xf32> to vector<1x256xf32>
    %89 = vector.extract_strided_slice %0 {offsets = [0, 6], sizes = [1, 1], strides = [1, 1]} : vector<1x9xf32> to vector<1x1xf32>
    %90 = vector.broadcast %89 : vector<1x1xf32> to vector<1x256xf32>
    %91 = arith.mulf %88, %90 : vector<1x256xf32>
    %92 = arith.addf %86, %91 : vector<1x256xf32>
    %c0_54 = arith.constant 0 : index
    %c0_55 = arith.constant 0 : index
    %c18 = arith.constant 18 : index
    %93 = vector.load %arg8[%c0_54, %c0_55, %c18] : memref<1x1x290xf32, #tpu.memory_space<vmem>>, vector<1x1x256xf32>
    %94 = vector.shape_cast %93 : vector<1x1x256xf32> to vector<1x256xf32>
    %95 = vector.extract_strided_slice %0 {offsets = [0, 7], sizes = [1, 1], strides = [1, 1]} : vector<1x9xf32> to vector<1x1xf32>
    %96 = vector.broadcast %95 : vector<1x1xf32> to vector<1x256xf32>
    %97 = arith.mulf %94, %96 : vector<1x256xf32>
    %98 = arith.addf %92, %97 : vector<1x256xf32>
    %c0_56 = arith.constant 0 : index
    %c0_57 = arith.constant 0 : index
    %c34 = arith.constant 34 : index
    %99 = vector.load %arg8[%c0_56, %c0_57, %c34] : memref<1x1x290xf32, #tpu.memory_space<vmem>>, vector<1x1x256xf32>
    %100 = vector.shape_cast %99 : vector<1x1x256xf32> to vector<1x256xf32>
    %101 = vector.extract_strided_slice %0 {offsets = [0, 8], sizes = [1, 1], strides = [1, 1]} : vector<1x9xf32> to vector<1x1xf32>
    %102 = vector.broadcast %101 : vector<1x1xf32> to vector<1x256xf32>
    %103 = arith.mulf %100, %102 : vector<1x256xf32>
    %104 = arith.addf %98, %103 : vector<1x256xf32>
    %c15_i32 = arith.constant 15 : i32
    %105 = vector.broadcast %c15_i32 : i32 to vector<1x256xi32>
    %106 = arith.cmpi eq, %28, %105 : vector<1x256xi32>
    %cst_58 = arith.constant 0.000000e+00 : f32
    %107 = vector.broadcast %cst_58 : f32 to vector<1x256xf32>
    %108 = arith.select %106, %107, %104 : vector<1x256xi1>, vector<1x256xf32>
    %109 = arith.addf %85, %108 : vector<1x256xf32>
    %110 = vector.broadcast %1 : vector<1x1xf32> to vector<1x256xf32>
    %111 = arith.addf %109, %110 : vector<1x256xf32>
    %cst_59 = arith.constant dense<0.000000e+00> : vector<256xf32>
    %112 = vector.multi_reduction <add>, %111, %cst_59 [0] : vector<1x256xf32> to vector<256xf32>
    %113 = vector.shape_cast %112 : vector<256xf32> to vector<1x256xf32>
    %cst_60 = arith.constant 1.000000e+00 : f32
    %114 = vector.broadcast %cst_60 : f32 to vector<1x256xf32>
    %115 = arith.divf %113, %114 : vector<1x256xf32>
    %116 = arith.subf %111, %115 : vector<1x256xf32>
    %117 = arith.mulf %116, %116 : vector<1x256xf32>
    %cst_61 = arith.constant dense<0.000000e+00> : vector<256xf32>
    %118 = vector.multi_reduction <add>, %117, %cst_61 [0] : vector<1x256xf32> to vector<256xf32>
    %119 = vector.shape_cast %118 : vector<256xf32> to vector<1x256xf32>
    %cst_62 = arith.constant 1.000000e+00 : f32
    %120 = vector.broadcast %cst_62 : f32 to vector<1x256xf32>
    %121 = arith.divf %119, %120 : vector<1x256xf32>
    %122 = arith.subf %111, %115 : vector<1x256xf32>
    %cst_63 = arith.constant 9.99999974E-5 : f32
    %123 = vector.broadcast %cst_63 : f32 to vector<1x256xf32>
    %124 = arith.addf %121, %123 : vector<1x256xf32>
    %125 = math.rsqrt %124 : vector<1x256xf32>
    %126 = arith.mulf %122, %125 : vector<1x256xf32>
    %127 = vector.broadcast %2 : vector<1x1xf32> to vector<1x256xf32>
    %128 = arith.mulf %126, %127 : vector<1x256xf32>
    %129 = vector.broadcast %3 : vector<1x1xf32> to vector<1x256xf32>
    %130 = arith.addf %128, %129 : vector<1x256xf32>
    %131 = vector.broadcast %4 : vector<8x1xf32> to vector<8x256xf32>
    %132 = vector.broadcast %130 : vector<1x256xf32> to vector<8x256xf32>
    %133 = arith.mulf %131, %132 : vector<8x256xf32>
    %134 = vector.broadcast %5 : vector<8x1xf32> to vector<8x256xf32>
    %135 = arith.addf %133, %134 : vector<8x256xf32>
    %cst_64 = arith.constant 0.000000e+00 : f32
    %136 = vector.broadcast %cst_64 : f32 to vector<8x256xf32>
    %137 = arith.maximumf %135, %136 : vector<8x256xf32>
    %cst_65 = arith.constant dense<0.000000e+00> : vector<8x256xf32>
    %138 = tpu.matmul %6, %137, %cst_65 {dimension_numbers = #tpu.dot_dimension_numbers<[1], [0], [0], [1], [0, 0, 1, 1], [], []>} : vector<8x8xf32>, vector<8x256xf32>, vector<8x256xf32> -> vector<8x256xf32>
    %139 = vector.broadcast %7 : vector<8x1xf32> to vector<8x256xf32>
    %140 = arith.addf %138, %139 : vector<8x256xf32>
    %cst_66 = arith.constant 0.000000e+00 : f32
    %141 = vector.broadcast %cst_66 : f32 to vector<8x256xf32>
    %142 = arith.maximumf %140, %141 : vector<8x256xf32>
    %cst_67 = arith.constant dense<0.000000e+00> : vector<256xf32>
    %143 = vector.multi_reduction <add>, %142, %cst_67 [0] : vector<8x256xf32> to vector<256xf32>
    %144 = vector.shape_cast %143 : vector<256xf32> to vector<1x256xf32>
    %145 = vector.extract_strided_slice %144 {offsets = [0, 0], sizes = [1, 128], strides = [1, 1]} : vector<1x256xf32> to vector<1x128xf32>
    %146 = vector.extract_strided_slice %144 {offsets = [0, 128], sizes = [1, 128], strides = [1, 1]} : vector<1x256xf32> to vector<1x128xf32>
    %147 = arith.addf %145, %146 : vector<1x128xf32>
    %148 = vector.extract_strided_slice %147 {offsets = [0, 0], sizes = [1, 64], strides = [1, 1]} : vector<1x128xf32> to vector<1x64xf32>
    %149 = vector.extract_strided_slice %147 {offsets = [0, 64], sizes = [1, 64], strides = [1, 1]} : vector<1x128xf32> to vector<1x64xf32>
    %150 = arith.addf %148, %149 : vector<1x64xf32>
    %151 = vector.extract_strided_slice %150 {offsets = [0, 0], sizes = [1, 32], strides = [1, 1]} : vector<1x64xf32> to vector<1x32xf32>
    %152 = vector.extract_strided_slice %150 {offsets = [0, 32], sizes = [1, 32], strides = [1, 1]} : vector<1x64xf32> to vector<1x32xf32>
    %153 = arith.addf %151, %152 : vector<1x32xf32>
    %154 = vector.extract_strided_slice %153 {offsets = [0, 0], sizes = [1, 16], strides = [1, 1]} : vector<1x32xf32> to vector<1x16xf32>
    %155 = vector.extract_strided_slice %153 {offsets = [0, 16], sizes = [1, 16], strides = [1, 1]} : vector<1x32xf32> to vector<1x16xf32>
    %156 = arith.addf %154, %155 : vector<1x16xf32>
    %cst_68 = arith.constant 7.812500e-03 : f32
    %157 = vector.broadcast %cst_68 : f32 to vector<1x16xf32>
    %158 = arith.mulf %156, %157 : vector<1x16xf32>
    %cst_69 = arith.constant dense<0.000000e+00> : vector<1x8xf32>
    %159 = tpu.matmul %158, %8, %cst_69 {dimension_numbers = #tpu.dot_dimension_numbers<[1], [0], [0], [1], [0, 0, 1, 1], [], []>} : vector<1x16xf32>, vector<16x8xf32>, vector<1x8xf32> -> vector<1x8xf32>
    %160 = arith.addf %159, %9 : vector<1x8xf32>
    %cst_70 = arith.constant 0.000000e+00 : f32
    %161 = vector.broadcast %cst_70 : f32 to vector<1x8xf32>
    %162 = arith.maximumf %160, %161 : vector<1x8xf32>
    %cst_71 = arith.constant dense<0.000000e+00> : vector<1x16xf32>
    %163 = tpu.matmul %162, %10, %cst_71 {dimension_numbers = #tpu.dot_dimension_numbers<[1], [0], [0], [1], [0, 0, 1, 1], [], []>} : vector<1x8xf32>, vector<8x16xf32>, vector<1x16xf32> -> vector<1x16xf32>
    %164 = arith.addf %163, %11 : vector<1x16xf32>
    %165 = arith.negf %164 : vector<1x16xf32>
    %166 = math.exp %165 : vector<1x16xf32>
    %cst_72 = arith.constant 1.000000e+00 : f32
    %167 = vector.broadcast %cst_72 : f32 to vector<1x16xf32>
    %168 = arith.addf %167, %166 : vector<1x16xf32>
    %169 = arith.divf %167, %168 : vector<1x16xf32>
    %170 = tpu.concatenate %169, %169 in 1 : vector<1x16xf32>, vector<1x16xf32> -> vector<1x32xf32>
    %171 = tpu.concatenate %170, %170 in 1 : vector<1x32xf32>, vector<1x32xf32> -> vector<1x64xf32>
    %172 = tpu.concatenate %171, %171 in 1 : vector<1x64xf32>, vector<1x64xf32> -> vector<1x128xf32>
    %173 = tpu.concatenate %172, %172 in 1 : vector<1x128xf32>, vector<1x128xf32> -> vector<1x256xf32>
    %174 = vector.broadcast %173 : vector<1x256xf32> to vector<8x256xf32>
    %175 = arith.mulf %142, %174 : vector<8x256xf32>
    %c0_73 = arith.constant 0 : index
    %c0_74 = arith.constant 0 : index
    %c0_75 = arith.constant 0 : index
    %176 = vector.load %arg1[%c0_73, %c0_74, %c0_75] : memref<1x1x256xf32, #tpu.memory_space<vmem>>, vector<1x1x256xf32>
    %177 = vector.shape_cast %176 : vector<1x1x256xf32> to vector<1x256xf32>
    %178 = vector.broadcast %177 : vector<1x256xf32> to vector<8x256xf32>
    %179 = arith.addf %178, %175 : vector<8x256xf32>
    %c0_76 = arith.constant 0 : index
    %c0_77 = arith.constant 0 : index
    %c0_78 = arith.constant 0 : index
    %180 = vector.load %arg7[%c0_76, %c0_77, %c0_78] : memref<1x8x256xf32, #tpu.memory_space<vmem>>, vector<1x8x256xf32>
    %181 = vector.shape_cast %180 : vector<1x8x256xf32> to vector<8x256xf32>
    %182 = vector.shape_cast %179 : vector<8x256xf32> to vector<1x8x256xf32>
    tpu.vector_store %arg7[%c0_76, %c0_77, %c0_78], %182 {strides = array<i32>} : memref<1x8x256xf32, #tpu.memory_space<vmem>>, vector<1x8x256xf32>,
    return
  }
  func.func @transform_0(%arg0: i32) -> (i32, i32, i32) {
    %c0_i32 = arith.constant 0 : i32
    %c0_i32_0 = arith.constant 0 : i32
    %c0_i32_1 = arith.constant 0 : i32
    return %arg0, %c0_i32, %c0_i32_0 : i32, i32, i32
  }
  func.func @transform_1(%arg0: i32) -> (i32, i32) {
    %c0_i32 = arith.constant 0 : i32
    %c0_i32_0 = arith.constant 0 : i32
    %c0_i32_1 = arith.constant 0 : i32
    return %c0_i32, %c0_i32_0 : i32, i32
  }
  func.func @transform_2(%arg0: i32) -> (i32, i32) {
    %c0_i32 = arith.constant 0 : i32
    %c0_i32_0 = arith.constant 0 : i32
    %c0_i32_1 = arith.constant 0 : i32
    return %c0_i32, %c0_i32_0 : i32, i32
  }
  func.func @transform_3(%arg0: i32) -> (i32, i32) {
    %c0_i32 = arith.constant 0 : i32
    %c0_i32_0 = arith.constant 0 : i32
    %c0_i32_1 = arith.constant 0 : i32
    return %c0_i32, %c0_i32_0 : i32, i32
  }
  func.func @transform_4(%arg0: i32) -> (i32, i32) {
    %c0_i32 = arith.constant 0 : i32
    %c0_i32_0 = arith.constant 0 : i32
    %c0_i32_1 = arith.constant 0 : i32
    return %c0_i32, %c0_i32_0 : i32, i32
  }
  func.func @transform_5(%arg0: i32) -> (i32, i32) {
    %c0_i32 = arith.constant 0 : i32
    %c0_i32_0 = arith.constant 0 : i32
    %c0_i32_1 = arith.constant 0 : i32
    return %c0_i32, %c0_i32_0 : i32, i32
  }
  func.func @transform_6(%arg0: i32) -> (i32, i32, i32) {
    %c0_i32 = arith.constant 0 : i32
    %c0_i32_0 = arith.constant 0 : i32
    %c0_i32_1 = arith.constant 0 : i32
    return %arg0, %c0_i32, %c0_i32_0 : i32, i32, i32
  }
}

</mosaic_0001>

<bundles_post_ra>
// kernel: tpu_custom_call.1
= control target key start
LH: loop header
LB: loop body
LE: loop exit
PB: predicated region body
PF: predicated region fallthrough
CT: control target
= control target key end

     0   :  { %11 = vsyncpa [#allocation4], 0  ;;  %s1176_s0 = inlined_call_operand.vmem [shape: f32[2,1,256], index: 0, kind: input, shape index: {}]   ;;  %s1177_s1 = inlined_call_operand.vmem [shape: f32[1,12], index: 1, kind: input, shape index: {}]   ;;  %s1178_s2 = inlined_call_operand.vmem [shape: f32[8,2], index: 2, kind: input, shape index: {}]   ;;  %s1179_s3 = inlined_call_operand.vmem [shape: f32[8,9], index: 3, kind: input, shape index: {}]   ;;  %s1180_s4 = inlined_call_operand.vmem [shape: f32[17,8], index: 4, kind: input, shape index: {}]   ;;  %s1181_s5 = inlined_call_operand.vmem [shape: f32[9,16], index: 5, kind: input, shape index: {}]   ;;  %s1182_s6 = inlined_call_operand.hbm [shape: f32[2,8,256], index: 6, kind: output, shape index: {}]  }
   0x1   :  { %13 = vsyncpa [#allocation4 + $0x1], 0  ;;  %s998_s21 = smov 0   ;;  %s1000_s22 = smov 0  }
   0x2   :  { %s1002_s23 = smov 0   ;;  %s1004_s24 = smov 0  }
   0x3 LB: > { %s1019_s25 = sadd.s32 4294967295, %s940_s24   ;;  %s777_s26 = sadd.s32 4294967294, %s940_s24   ;;  %s940_s24 = sphi %s1004_s24, %s1190_s24   ;;  %s936_s23 = sphi %s1002_s23, %s1189_s23   ;;  %s932_s22 = sphi %s1000_s22, %s1188_s22   ;;  %s928_s21 = sphi %s998_s21, %s1187_s21  }
   0x4   : > { %s1023_s27 = sadd.s32 1, %s940_s24   ;;  %s157_s28 = sadd.s32 1, %s936_s23 }
   0x5   : > { %s154_s29 = ssub.s32 %s940_s24, %s1023_s27  ;;  %p167_p0 = scmp.ne.s32.totalorder %s936_s23, %s932_s22 }
   0x6   : > { %p155_p1 = scmp.eq.s32.totalorder %s154_s29, 0  ;;  %p168_p2 = scmp.eq.s32.totalorder %s1019_s25, 1 }
   0x7   : > { %p173_p3 = scmp.ne.s32.totalorder %s932_s22, %s928_s21  ;;  %p174_p4 = scmp.eq.s32.totalorder %s777_s26, 1 }
   0x8   : > { %s1034_s30 = scalar_select %p155_p1, %s936_s23, %s157_s28  }
   0x9   : > { %p1036_p5 = por %p168_p2, %p167_p0  ;;  %p1040_p6 = por %p174_p4, %p173_p3 }
   0xa   : > { %p780_p7 = scmp.ge.s32.totalorder %s940_s24, 1  ;;  %p214_p8 = scmp.lt.s32.totalorder %s940_s24, 3 }
   0xc   : > { %p215_p9 = pnand %p780_p7, %p214_p8 }
   0xd   : > { %p243_p10 = scmp.lt.s32.totalorder (!%p215_p9), %s1019_s25, 1  ;;  %s945_s16 = smov (!%p215_p9), 17  }
   0xe   : > { %218 = sbr.rel (%p215_p9) target bundleno = 1556 (0x614), region = 44  ;;  %s953_s17 = smov (!%p215_p9), 112  }
   0xf   : > { %s954_s18 = smov (!%p215_p9), 96   ;;  %s958_s19 = smov (!%p215_p9), 127  }
  0x10   : > { %s959_s20 = smov (!%p215_p9), 126   ;;  %s960_s10 = smov (!%p215_p9), 64  }
  0x11   : > { %s961_s28 = smov (!%p215_p9), 16   ;;  %s962_s29 = smov (!%p215_p9), 32  }
  0x12   : > { %s240_s9 = sand.u32 (!%p215_p9), 1, %s932_s22  }
  0x13   : > { %v1049_v0 = vld [vmem:[%s1177_s1] sm:$0x1]  ;;  %v942_v1 = vmov 7   ;;  %s244_s11 = scalar_select %p243_p10, %s1019_s25, 1  ;;  %v943_v2 = vmov 4   ;;  %v944_v3 = vmov 8   ;;  %v255_v10 = vlaneseq }
  0x14   : > { %855 = vset.pattern.permute.xlu1 %v942_v1  ;;  %854 = vset.pattern.permute.xlu0 %v943_v2  ;;  %v946_v5 = vmov 5   ;;  %v947_v6 = vmov 1   ;;  %v948_v7 = vmov 2   ;;  %v949_v8 = vmov 3  }
  0x15   : > { %409 = vperm.xlu1 %855, %v1049_v0   ;;  %857 = vset.pattern.permute.xlu2 %v944_v3  ;;  %s782_s12 = sshll.u32 %s244_s11, 1  ;;  %v950_v9 = vmov 6   ;;  %vm285_vm0 = vcmp.lt.s32.totalorder %v255_v10, 17  ;;  %vm1071_vm1 = vcmp.ge.s32.totalorder %v255_v10, 17  ;;  %vm289_vm2 = vcmp.lt.s32.totalorder %v255_v10, 34  ;;  %s781_s11 = sshll.u32 %s240_s9, 4 }
  0x16   : > { %422 = vperm.xlu2 %857, %v1049_v0   ;;  %s1059_s15 = scalar_lea.vmem %s1176_s0, %s782_s12  ;;  %v951_v12 = vmov 0.0   ;;  %vm290_vm3 = vmand %vm1071_vm1, %vm289_vm2  ;;  %v952_v13 = vmov 0   ;;  %vm299_vm4 = vcmp.lt.s32.totalorder %v255_v10, 273  ;;  %vm296_vm5 = vcmask 138240   ;;  %s793_s12 = sshll.u32 %s1019_s25, 4 }
  0x17   : > { %v282_v4 = vld [vmem:[%s1059_s15] sm:$0x3]  ;;  %287 = vst.msk [vmem:[#allocation2] sm:$0x1] %vm285_vm0, %v951_v12  ;;  %vm300_vm6 = vmand %vm1071_vm1, %vm299_vm4  ;;  %v955_v37 = vmov 9   ;;  %v956_v41 = vmov 10  }
  0x18   : > { %293 = vrot.lane.b32.xlu0 %v282_v4, %s945_s16  ;;  %291 = vst.msk [vmem:[#allocation2 + $0x2] sm:$0x1] %vm290_vm3, %v951_v12  ;;  %v957_v42 = vmov 11   ;;  %vm322_vm7 = vcmask 916480   ;;  %vm336_vm8 = vcmask 785408   ;;  %vm394_vm9 = vcmask 1039360   ;;  %s713_s16 = scalar_lea.hbm %s1182_s6, %s793_s12 }
  0x19   : > { %vm446_vm12 = vcmask 1031168   ;;  %s702_s25 = scalar_lea.sflag [#allocation4], %s240_s9 }
  0x1d   : > { %856 = vset.pattern.permute.xlu1 %v946_v5 }
  0x1e   : > { %372 = vperm.xlu1 %856, %v1049_v0   ;;  %858 = vset.pattern.permute.xlu2 %v947_v6 }
  0x1f   : > { %313 = vperm.xlu2 %858, %v1049_v0  }
  0x20   : > { %359 = vperm.xlu0 %854, %v1049_v0  }
  0x26   : > { %859 = vset.pattern.permute.xlu1 %v948_v7 }
  0x27   : > { %327 = vperm.xlu1 %859, %v1049_v0   ;;  %860 = vset.pattern.permute.xlu2 %v949_v8 }
  0x28   : > { %352 = vperm.xlu2 %860, %v1049_v0   ;;  %864 = vset.pattern.permute.xlu0 %v956_v41 }
  0x2f   : > { %861 = vset.pattern.permute.xlu1 %v950_v9 }
  0x30   : > { %402 = vperm.xlu1 %861, %v1049_v0   ;;  %862 = vset.pattern.permute.xlu2 %v952_v13 }
  0x38   : > { %865 = vset.pattern.permute.xlu1 %v957_v42 }
  0x70   : > { %v423_v19 = vpop.permute.xlu2 %422 }
  0x71   : > { %v425_v21 = vperm.slane %v423_v19, 0 }
  0x79   : > { %v314_v33 = vpop.permute.xlu2 %313 }
  0x7a   : > { %v316_v34 = vperm.slane %v314_v33, 0 }
  0x82   : > { %v353_v36 = vpop.permute.xlu2 %352 }
  0x83   : > { %v355_v44 = vperm.slane %v353_v36, 0 }
  0x87   : > { %v410_v14 = vpop.permute.xlu1 %409 }
  0x88   : > { %v412_v22 = vperm.slane %v410_v14, 0 }
  0x8a   : > { %v294_v15 = vpop.permute.xlu0 %293 }
  0x8b   : > { %v295_v16 = vrot.slane %v294_v15, 7 }
  0x8d   : > { %v297_v17 = vsel %vm296_vm5, %v295_v16, %v294_v15  ;;  %vm530_vm5 = vcmask 64512  }
  0x8e   : > { %301 = vst.msk [vmem:[#allocation2] sm:$0x7] %vm300_vm6, %v297_v17  ;;  %vm604_vm6 = vcmask 130048  }
  0x90   : > { %v373_v18 = vpop.permute.xlu1 %372 }
  0x91   : > { %v375_v29 = vperm.slane %v373_v18, 0 }
  0x92   : > { %v360_v20 = vpop.permute.xlu0 %359 }
  0x93   : > { %v362_v23 = vperm.slane %v360_v20, 0  ;;  %v248_v20 = vld [vmem:[%s1178_s2] sm:$0xff] }
  0x95   : > { %v311_v24 = vld [vmem:[#allocation2] sm:$0x7] }
  0x96   : > { %v363_v25 = vmul.f32 %v362_v23, %v311_v24  ;;  %v426_v26 = vmul.f32 %v425_v21, %v311_v24  ;;  %v413_v27 = vmul.f32 %v412_v22, %v311_v24  ;;  %v376_v31 = vmul.f32 %v375_v29, %v311_v24  ;;  %v302_v5 = vld [vmem:[#allocation2] sm:$0x3] }
  0x97   : > { %v317_v35 = vmul.f32 %v316_v34, %v311_v24  ;;  %v356_v47 = vmul.f32 %v355_v44, %v311_v24  ;;  %v256_v22 = vand.u32 127, %v255_v10 }
  0x98   : > { %365 = vrot.lane.b32.xlu0 %v363_v25, %s953_s17  ;;  %428 = vrot.lane.b32.xlu1 %v426_v26, %s954_s18 }
  0x99   : > { %v328_v28 = vpop.permute.xlu1 %327  ;;  %415 = vrot.lane.b32.xlu2 %v413_v27, %s953_s17  ;;  %v262_v26 = vand.u32 15, %v256_v22 }
  0x9a   : > { %v330_v30 = vperm.slane %v328_v28, 0 }
  0x9b   : > { %vm340_vm10 = vcmp.eq.s32.totalorder %v262_v26, 0  ;;  %vm434_vm13 = vcmp.eq.s32.totalorder %v262_v26, 15 }
  0x9c   : > { %v331_v32 = vmul.f32 %v330_v30, %v311_v24 }
  0xa0   : > { %378 = vrot.lane.b32.xlu0 %v376_v31, %s954_s18  ;;  %333 = vrot.lane.b32.xlu1 %v331_v32, %s954_s18 }
  0xa1   : > { %305 = vperm.xlu2 %862, %v1049_v0  }
  0xa2   : > { %v403_v38 = vpop.permute.xlu1 %402 }
  0xa3   : > { %v405_v49 = vperm.slane %v403_v38, 0 }
  0xa5   : > { %v406_v57 = vmul.f32 %v405_v49, %v311_v24  ;;  %v257_v24 = vadd.s32 128, %v256_v22 }
  0xa7   : > { %v269_v27 = vand.u32 15, %v257_v24 }
  0xa8   : > { %319 = vrot.lane.b32.xlu0 %v317_v35, %s953_s17 }
  0xa9   : > { %863 = vset.pattern.permute.xlu2 %v955_v37  ;;  %vm341_vm11 = vcmp.eq.s32.totalorder %v269_v27, 0  ;;  %vm435_vm14 = vcmp.eq.s32.totalorder %v269_v27, 15 }
  0xf3   : > { %v416_v40 = vpop.permute.xlu2 %415 }
  0xf4   : > { %v417_v50 = vrot.slane %v416_v40, 1 }
  0xf6   : > { %v418_v58 = vsel %vm322_vm7, %v416_v40, %v417_v50  ;;  %v249_v50 = vld [vmem:[%s1179_s3] sm:$0xff] }
  0xf7   : > { %v420_v2 = vadd.f32 %v418_v58, %v406_v57 }
  0xfb   : > { %v306_v53 = vpop.permute.xlu2 %305 }
  0xfc   : > { %v308_v59 = vperm.slane %v306_v53, 0 }
  0xfe   : > { %v309_v9 = vmul.f32 %v308_v59, %v302_v5 }
 0x10a   : > { %v366_v39 = vpop.permute.xlu0 %365  ;;  %v429_v45 = vpop.permute.xlu1 %428 }
 0x10b   : > { %v367_v43 = vrot.slane %v366_v39, 1  ;;  %v430_v54 = vrot.slane %v429_v45, 1 }
 0x10d   : > { %v368_v46 = vsel %vm322_vm7, %v366_v39, %v367_v43  ;;  %v431_v1 = vsel %vm336_vm8, %v429_v45, %v430_v54 }
 0x10e   : > { %v370_v52 = vadd.f32 %v368_v46, %v356_v47  ;;  %v433_v11 = vadd.f32 %v431_v1, %v420_v2 }
 0x110   : > { %v439_v17 = vperm.slane %v433_v11, 2  ;;  %v438_v18 = vperm.slane %v433_v11, 1  ;;  %v437_v19 = vperm.slane %v433_v11, 0 }
 0x112   : > { %v379_v48 = vpop.permute.xlu0 %378  ;;  %v334_v60 = vpop.permute.xlu1 %333 }
 0x113   : > { %v380_v51 = vrot.slane %v379_v48, 1  ;;  %v335_v7 = vrot.slane %v334_v60, 1 }
 0x115   : > { %v381_v55 = vsel %vm336_vm8, %v379_v48, %v380_v51  ;;  %v337_v15 = vsel %vm336_vm8, %v334_v60, %v335_v7 }
 0x116   : > { %v383_v56 = vadd.f32 %v381_v55, %v370_v52 }
 0x118   : > { %v387_v61 = vperm.slane %v383_v56, 2  ;;  %v386_v62 = vperm.slane %v383_v56, 1  ;;  %v385_v63 = vperm.slane %v383_v56, 0 }
 0x11a   : > { %392 = vrot.lane.b32.xlu1 %v387_v61, %s958_s19  ;;  %390 = vrot.lane.b32.xlu0 %v386_v62, %s958_s19  ;;  %v320_v4 = vpop.permute.xlu0 %319 }
 0x11b   : > { %388 = vrot.lane.b32.xlu2 %v385_v63, %s958_s19  ;;  %v321_v8 = vrot.slane %v320_v4, 1 }
 0x11d   : > { %v323_v12 = vsel %vm322_vm7, %v320_v4, %v321_v8 }
 0x11e   : > { %v325_v14 = vadd.f32 %v323_v12, %v309_v9 }
 0x120   : > { %v339_v16 = vadd.f32 %v337_v15, %v325_v14 }
 0x122   : > { %444 = vrot.lane.b32.xlu1 %v439_v17, %s959_s20  ;;  %442 = vrot.lane.b32.xlu0 %v438_v18, %s959_s20  ;;  %v343_v28 = vperm.slane %v339_v16, 0 }
 0x123   : > { %440 = vrot.lane.b32.xlu2 %v437_v19, %s959_s20 }
 0x12a   : > { %495 = vperm.xlu0 %864, %v1049_v0   ;;  %502 = vperm.xlu1 %865, %v1049_v0  }
 0x12b   : > { %456 = vperm.xlu2 %863, %v1049_v0  }
 0x132   : > { %867 = vset.pattern.permute.xlu1 %v947_v6  ;;  %869 = vset.pattern.permute.xlu0 %v944_v3  ;;  %v344_v6 = vperm.slane %v339_v16, 1 }
 0x133   : > { %518 = vperm.xlu1 %867, %v248_v20   ;;  %866 = vset.pattern.permute.xlu2 %v952_v13 }
 0x134   : > { %510 = vperm.xlu2 %866, %v248_v20   ;;  %v348_v31 = vsel %vm341_vm11, 0.0, %v344_v6  ;;  %vm680_vm11 = vcmask 261120  }
 0x13c   : > { %868 = vset.pattern.permute.xlu2 %v944_v3  ;;  %v347_v3 = vsel %vm340_vm10, 0.0, %v343_v28 }
 0x13d   : > { %527 = vperm.xlu2 %868, %v249_v50  }
 0x175   : > { %v389_v21 = vpop.permute.xlu2 %388 }
 0x17d   : > { %v441_v23 = vpop.permute.xlu2 %440 }
 0x185   : > { %v457_v29 = vpop.permute.xlu2 %456 }
 0x186   : > { %v459_v33 = vperm.slane %v457_v29, 0 }
 0x18c   : > { %v393_v0 = vpop.permute.xlu1 %392  ;;  %v391_v25 = vpop.permute.xlu0 %390 }
 0x18d   : > { %v395_v30 = vsel %vm394_vm9, %v389_v21, %v391_v25  ;;  %v396_v13 = vsel %vm394_vm9, %v391_v25, %v393_v0 }
 0x18e   : > { %v399_v34 = vadd.f32 %v395_v30, %v347_v3  ;;  %v400_v35 = vadd.f32 %v396_v13, %v348_v31  ;;  %v511_v16 = vpop.permute.xlu2 %510 }
 0x194   : > { %v445_v10 = vpop.permute.xlu1 %444  ;;  %v443_v32 = vpop.permute.xlu0 %442 }
 0x195   : > { %v447_v36 = vsel %vm446_vm12, %v441_v23, %v443_v32  ;;  %v448_v37 = vsel %vm446_vm12, %v443_v32, %v445_v10  ;;  %vm686_vm12 = vcmask 523264  }
 0x196   : > { %v451_v38 = vsel %vm434_vm13, 0.0, %v447_v36  ;;  %v452_v39 = vsel %vm435_vm14, 0.0, %v448_v37 }
 0x197   : > { %v453_v40 = vadd.f32 %v451_v38, %v399_v34  ;;  %v454_v41 = vadd.f32 %v452_v39, %v400_v35  ;;  %v528_v25 = vpop.permute.xlu2 %527 }
 0x199   : > { %v460_v42 = vadd.f32 %v459_v33, %v453_v40  ;;  %v461_v43 = vadd.f32 %v459_v33, %v454_v41 }
 0x19b   : > { %v464_v44 = vsub.f32 %v460_v42, %v460_v42  ;;  %v465_v45 = vsub.f32 %v461_v43, %v461_v43 }
 0x19c   : > { %v496_v60 = vpop.permute.xlu0 %495  ;;  %v503_v63 = vpop.permute.xlu1 %502 }
 0x19d   : > { %v466_v46 = vmul.f32 %v464_v44, %v464_v44  ;;  %v467_v47 = vmul.f32 %v465_v45, %v465_v45  ;;  %v498_v2 = vperm.slane %v496_v60, 0  ;;  %v505_v8 = vperm.slane %v503_v63, 0 }
 0x19f   : > { %v470_v48 = vadd.f32 0.0001, %v466_v46  ;;  %v471_v49 = vadd.f32 0.0001, %v467_v47  ;;  %v250_v46 = vld [vmem:[%s1180_s4] sm:$0xff] }
 0x1a1   : > { %870 = vrsqrt.f32 %v470_v48  ;;  %vm478_vm1 = vweird.f32 %v470_v48  ;;  %vm488_vm3 = vweird.f32 %v471_v49 }
 0x1a2   : > { %872 = vrsqrt.f32 %v471_v49 }
 0x1a5   : > { %v519_v19 = vpop.permute.xlu1 %518 }
 0x1a7   : > { %v871_v51 = vpop.eup %870 }
 0x1a8   : > { %v873_v52 = vpop.eup %872  ;;  %v473_v53 = vmul.f32 %v871_v51, %v470_v48  ;;  %vm479_vm15 = vweird.f32 %v871_v51 }
 0x1a9   : > { %v483_v54 = vmul.f32 %v873_v52, %v471_v49  ;;  %vm489_vm0 = vweird.f32 %v873_v52  ;;  %vm480_vm2 = vmor %vm478_vm1, %vm479_vm15 }
 0x1aa   : > { %v474_v55 = vmul.f32 %v871_v51, %v473_v53  ;;  %vm490_vm4 = vmor %vm488_vm3, %vm489_vm0 }
 0x1ab   : > { %v484_v56 = vmul.f32 %v873_v52, %v483_v54 }
 0x1ac   : > { %v475_v57 = vmul.f32 0.5, %v474_v55  ;;  %v254_v55 = vld [vmem:[%s1181_s5 + $0x8] sm:$0x1] }
 0x1ad   : > { %v485_v58 = vmul.f32 0.5, %v484_v56 }
 0x1ae   : > { %v476_v59 = vsub.f32 1.5, %v475_v57 }
 0x1af   : > { %v486_v61 = vsub.f32 1.5, %v485_v58 }
 0x1b0   : > { %v477_v62 = vmul.f32 %v871_v51, %v476_v59 }
 0x1b1   : > { %v487_v1 = vmul.f32 %v873_v52, %v486_v61 }
 0x1b2   : > { %v481_v4 = vsel %vm480_vm2, %v871_v51, %v477_v62  ;;  %v252_v51 = vld [vmem:[%s1180_s4 + $0x10] sm:$0x1] }
 0x1b3   : > { %v491_v5 = vsel %vm490_vm4, %v873_v52, %v487_v1  ;;  %v492_v7 = vmul.f32 %v481_v4, %v464_v44 }
 0x1b4   : > { %v493_v9 = vmul.f32 %v491_v5, %v465_v45  ;;  %v251_v45 = vld [vmem:[%s1180_s4 + $0x8] sm:$0xff] }
 0x1b5   : > { %v499_v11 = vmul.f32 %v498_v2, %v492_v7  ;;  %622 = vmatpush.msra.mxu2 %v251_v45 }
 0x1b6   : > { %v500_v12 = vmul.f32 %v498_v2, %v493_v9 }
 0x1b7   : > { %v506_v14 = vadd.f32 %v505_v8, %v499_v11  ;;  %623 = vmatpush.msra.mxu2 %v250_v46 }
 0x1b8   : > { %v507_v15 = vadd.f32 %v505_v8, %v500_v12 }
 0x1b9   : > { %v513_v17 = vperm.slane %v506_v14, 0 }
 0x1ba   : > { %v514_v18 = vperm.slane %v507_v15, 0 }
 0x1bb   : > { %v515_v20 = vmul.f32 %v513_v17, %v511_v16 }
 0x1bc   : > { %v516_v21 = vmul.f32 %v514_v18, %v511_v16  ;;  %v691_v16 = vld [vmem:[%s1059_s15] sm:$0x3] }
 0x1bd   : > { %v521_v22 = vadd.f32 %v519_v19, %v515_v20  ;;  %v694_v20 = vperm.slane %v691_v16, 1 }
 0x1be   : > { %v522_v23 = vadd.f32 %v519_v19, %v516_v21  ;;  %v693_v19 = vperm.slane %v691_v16, 0 }
 0x1bf   : > { %v523_v24 = vmax.f32 %v521_v22, 0.0 }
 0x1c0   : > { %v524_v0 = vmax.f32 %v522_v23, 0.0 }
 0x1c1   : > { %548 = vmatpush.msra.mxu0 %v523_v24 }
 0x1c2   : > { %568 = vmatpush.msra.mxu1 %v524_v0  ;;  %783 = vmatmul.msk.f32.vlgmr.msra.gmra.mxu0 %vm530_vm5, %v249_v50 }
 0x1c3   : > { %784 = vmatmul.msk.f32.vlgmr.msra.gmra.mxu1 %vm530_vm5, %v249_v50  ;;  %v253_v50 = vld [vmem:[%s1181_s5] sm:$0xff] }
 0x1c4   : > { %647 = vmatpush.msra.mxu3 %v253_v50 }
 0x23f   : > { %v550_v26 = vpop.f32.mrf.mxu0 }
 0x240   : > { %v551_v27 = vadd.f32 %v550_v26, %v528_v25  ;;  %v570_v28 = vpop.f32.mrf.mxu1 }
 0x241   : > { %v571_v6 = vadd.f32 %v570_v28, %v528_v25 }
 0x242   : > { %v1111_v29 = vmax.f32 %v551_v27, 0.0 }
 0x243   : > { %v1113_v30 = vmax.f32 %v571_v6, 0.0 }
 0x244   : > { %v575_v13 = vrot.slane %v1111_v29, 4 }
 0x245   : > { %v581_v3 = vrot.slane %v1113_v30, 4 }
 0x246   : > { %v576_v31 = vadd.f32 %v575_v13, %v1111_v29 }
 0x247   : > { %v582_v10 = vadd.f32 %v581_v3, %v1113_v30 }
 0x248   : > { %v577_v32 = vrot.slane %v576_v31, 2 }
 0x249   : > { %v583_v33 = vrot.slane %v582_v10, 2 }
 0x24a   : > { %v578_v34 = vadd.f32 %v577_v32, %v576_v31 }
 0x24b   : > { %v584_v35 = vadd.f32 %v583_v33, %v582_v10 }
 0x24c   : > { %v579_v36 = vrot.slane %v578_v34, 1 }
 0x24d   : > { %v585_v37 = vrot.slane %v584_v35, 1 }
 0x24e   : > { %v580_v38 = vadd.f32 %v579_v36, %v578_v34 }
 0x24f   : > { %v586_v39 = vadd.f32 %v585_v37, %v584_v35 }
 0x251   : > { %v587_v40 = vadd.f32 %v586_v39, %v580_v38 }
 0x253   : > { %589 = vrot.lane.b32.xlu0 %v587_v40, %s960_s10 }
 0x2c5   : > { %v590_v41 = vpop.permute.xlu0 %589 }
 0x2c6   : > { %v592_v42 = vadd.f32 %v590_v41, %v587_v40 }
 0x2c8   : > { %594 = vrot.lane.b32.xlu1 %v592_v42, %s954_s18 }
 0x33a   : > { %v595_v43 = vpop.permute.xlu1 %594 }
 0x33b   : > { %v597_v44 = vadd.f32 %v595_v43, %v592_v42 }
 0x33d   : > { %599 = vrot.lane.b32.xlu2 %v597_v44, %s953_s17  ;;  %s717_s17 = sshll.u32 %s713_s16, 4  ;;  %s718_s17 = int_to_ptr.hbm [resolvable:$true] %s717_s17 }
 0x33e   : > { %s892_s15 = sshra.s32 %s718_s17, 4  ;;  %s893_s15 = int_to_ptr.hbm [resolvable:$true] %s892_s15 }
 0x33f   : > { %s894_s19 = scalar_lea.hbm %s893_s15, 16  ;;  %p899_p0 = scmp.lt.s32.totalorder %s893_s15, %s1182_s6 }
 0x340   : > { %p895_p11 = scmp.ne.s32.totalorder %s893_s15, %s894_s19 }
 0x342   : > { %p896_p12 = pnand %p895_p11, %p1036_p5 }
 0x344   : > { %p897_p13 = pneg %p896_p12 }
 0x397   : > { %v600_v47 = vpop.permute.xlu2 %599 }
 0x398   : > { %v602_v48 = vadd.f32 %v600_v47, %v597_v44 }
 0x39a   : > { %v603_v49 = vmul.f32 0.0078125, %v602_v48 }
 0x39c   : > { %785 = vmatmul.msk.f32.vlgmr.msra.gmra.mxu2 %vm604_vm6, %v603_v49 }
 0x41f   : > { %v625_v52 = vpop.f32.mrf.mxu2 }
 0x420   : > { %v626_v53 = vadd.f32 %v625_v52, %v252_v51 }
 0x422   : > { %v628_v54 = vmax.f32 %v626_v53, 0.0 }
 0x424   : > { %786 = vmatmul.msk.f32.vlgmr.msra.gmra.mxu3 %vm530_vm5, %v628_v54 }
 0x4a7   : > { %v649_v56 = vpop.f32.mrf.mxu3 }
 0x4a8   : > { %v650_v57 = vadd.f32 %v649_v56, %v254_v55 }
 0x4aa   : > { %v787_v58 = vmul.f32 -1.442695, %v650_v57 }
 0x4ac   : > { %874 = vpow2.f32 %v787_v58 }
 0x4b2   : > { %v875_v59 = vpop.eup %874 }
 0x4b3   : > { %v655_v60 = vadd.f32 1.0, %v875_v59 }
 0x4b5   : > { %876 = vrcp.f32 %v655_v60  ;;  %v667_v1 = vand.u32 2147483648, %v655_v60  ;;  %v665_v4 = vand.u32 2147483647, %v655_v60  ;;  %vm661_vm8 = vweird.f32 %v655_v60 }
 0x4b7   : > { %v668_v7 = vor.u32 1.1754944e-38, %v667_v1  ;;  %vm666_vm10 = vcmp.eq.f32.partialorder %v665_v4, 8.507059e+37 }
 0x4bb   : > { %v877_v61 = vpop.eup %876 }
 0x4bc   : > { %v657_v62 = vmul.f32 %v877_v61, %v655_v60  ;;  %vm662_vm7 = vweird.f32 %v877_v61 }
 0x4bd   : > { %vm663_vm9 = vmor %vm661_vm8, %vm662_vm7 }
 0x4be   : > { %v658_v63 = vsub.f32 1.0, %v657_v62 }
 0x4c0   : > { %v659_v2 = vmul.f32 %v877_v61, %v658_v63 }
 0x4c2   : > { %v660_v5 = vadd.f32 %v877_v61, %v659_v2 }
 0x4c4   : > { %v664_v8 = vsel %vm663_vm9, %v877_v61, %v660_v5 }
 0x4c5   : > { %v669_v9 = vsel %vm666_vm10, %v668_v7, %v664_v8 }
 0x4c6   : > { %672 = vrot.lane.b32.xlu0 %v669_v9, %s961_s28  ;;  %s898_s28 = scalar_lea.hbm %s1182_s6, 32 }
 0x4c7   : > { %p900_p1 = scmp.lt.s32.totalorder %s898_s28, %s894_s19 }
 0x4c9   : > { %p901_p2 = por %p900_p1, %p899_p0 }
 0x4cb   : > { %p902_p3 = pnand %p901_p2, %p897_p13 }
 0x538   : > { %v673_v11 = vpop.permute.xlu0 %672 }
 0x539   : > { %v675_v12 = vsel %vm604_vm6, %v669_v9, %v673_v11 }
 0x53a   : > { %677 = vrot.lane.b32.xlu1 %v675_v12, %s962_s29 }
 0x5ac   : > { %v678_v14 = vpop.permute.xlu1 %677 }
 0x5ad   : > { %v681_v15 = vsel %vm680_vm11, %v675_v12, %v678_v14 }
 0x5ae   : > { %683 = vrot.lane.b32.xlu2 %v681_v15, %s960_s10  ;;  %s242_s10 = scalar_lea.vmem [#allocation3], %s781_s11 }
 0x5af   : > { %s715_s18 = sshll.u32 %s242_s10, 4  ;;  %s716_s18 = int_to_ptr.vmem [resolvable:$true] %s715_s18 }
 0x608   : > { %v684_v17 = vpop.permute.xlu2 %683 }
 0x609   : > { %v687_v18 = vsel %vm686_vm12, %v681_v15, %v684_v17 }
 0x60a   : > { %v688_v21 = vperm.slane %v687_v18, 0 }
 0x60c   : > { %v689_v22 = vmul.f32 %v688_v21, %v1111_v29  ;;  %v690_v23 = vmul.f32 %v688_v21, %v1113_v30 }
 0x60e   : > { %v697_v24 = vadd.f32 %v693_v19, %v689_v22  ;;  %v698_v0 = vadd.f32 %v694_v20, %v690_v23 }
 0x610   : > { %699 = vst [vmem:[%s242_s10] sm:$0xff] %v697_v24 }
 0x611   : > { %700 = vst [vmem:[%s242_s10 + $0x8] sm:$0xff] %v698_v0 }
 0x612   : > { %905 = shalt.err (!%p902_p3)
}
 0x613   : > { %794 = dma.vmem_to_hbm [thread:$0]  (%p1036_p5), %s716_s18, 256, %s718_s17, %s702_s25  }
 0x614 PF: > { %p800_p4 = scmp.ge.s32.totalorder %s940_s24, 2  ;;  %s729_s9 = sand.u32 1, %s928_s21  }
 0x615   : > { %s730_s12 = scalar_lea.sflag [#allocation4], %s729_s9 }
 0x616   : > { %p797_p7 = pnand %p800_p4, %p1040_p6 }
 0x618   : > { %p798_p8 = pneg %p797_p7 }
 0x61a   : > { %923 = dma.done.wait (%p798_p8), %s730_s12, 256  }
 0x61b   : > { %925 = vsyncadd (%p798_p8), %s730_s12, 4294967040  ;;  %p16_p9 = scmp.ge.s32.totalorder %s1023_s27, 4   ;;  %s1187_s21 = smov %s932_s22 }
 0x61c   : > { %s1188_s22 = smov %s936_s23  ;;  %s1189_s23 = smov %s1034_s30 }
 0x61d   : > { %s1190_s24 = smov %s1023_s27  ;;  %18 = sbr.rel (!%p16_p9) target bundleno = 3 (0x3), region = 79 }
 0x622   :  { %736 = vsyncpa [#allocation4], 1 }
 0x623   :  { %738 = vsyncpa [#allocation4 + $0x1], 1 }

</bundles_post_ra>
